<compile_context>
chip_gen: v7x
topology: tpu7x:2x2x1
jax: 0.10.0
libtpu: 0.0.40
codegen_flags: <defaults>
</compile_context>

<pallas_src>
import jax
import jax.numpy as jnp
from jax.experimental import pallas as pl
from jax.experimental.pallas import tpu as pltpu


# ----------------------------------------------------------------------------
# Kernel 1: Conv1d(in=C, out=O, kernel_size=3, stride=1, padding=1) over seq axis
# ----------------------------------------------------------------------------
def _conv1d_seq_kernel(xp_ref, wm_ref, w0_ref, wp_ref, b_ref, o_ref):
    # xp_ref: (1, S+2, C)  zero-padded sequence (halo of 1 row on each side)
    # wm/w0/wp: (C, O) weight taps for x[s-1], x[s], x[s+1];  b: (1, O)
    # o_ref: (1, S, O)
    S = o_ref.shape[1]
    xp = xp_ref[0]                                           # (S+2, C)
    out = (jnp.dot(xp[0:S, :],     wm_ref[...], preferred_element_type=jnp.float32)
           + jnp.dot(xp[1:S + 1, :], w0_ref[...], preferred_element_type=jnp.float32)
           + jnp.dot(xp[2:S + 2, :], wp_ref[...], preferred_element_type=jnp.float32)
           + b_ref[...])
    o_ref[0] = out.astype(o_ref.dtype)


def conv1d_seq(x, w_prev, w_cur, w_next, bias):
    """x: (B, S, C) -> (B, S, O); equivalent to Conv1d(k=3, pad=1) on (B, C, S)."""
    B, S, C = x.shape
    O = w_cur.shape[1]
    xp = jnp.pad(x, ((0, 0), (1, 1), (0, 0)))                # halo padding (boundary only)
    return pl.pallas_call(
        _conv1d_seq_kernel,
        out_shape=jax.ShapeDtypeStruct((B, S, O), x.dtype),
        grid=(B,),
        in_specs=[
            pl.BlockSpec((1, S + 2, C), lambda b: (b, 0, 0)),
            pl.BlockSpec((C, O), lambda b: (0, 0)),          # resident across batch loop
            pl.BlockSpec((C, O), lambda b: (0, 0)),
            pl.BlockSpec((C, O), lambda b: (0, 0)),
            pl.BlockSpec((1, O), lambda b: (0, 0)),
        ],
        out_specs=pl.BlockSpec((1, S, O), lambda b: (b, 0, 0)),
        compiler_params=pltpu.CompilerParams(dimension_semantics=("parallel",)),
    )(xp, w_prev, w_cur, w_next, bias)


# ----------------------------------------------------------------------------
# Kernel 2: 2-layer LSTM over a length-masked sequence -> final (h_n, c_n)
# ----------------------------------------------------------------------------
def _lstm2_kernel(x_ref, len_ref, wih0_ref, whh0_ref, b0_ref,
                  wih1_ref, whh1_ref, b1_ref, hn_ref, cn_ref):
    # x_ref: (1, B, C) block at time t (time-major stream)
    # len_ref: (B, 1) int32 sequence lengths
    # wih*/whh*: (in, 4H) / (H, 4H); b*: (1, 4H)   (PyTorch gate order i, f, g, o)
    # hn_ref / cn_ref: (2, B, H) outputs, doubling as the resident recurrent carry
    t = pl.program_id(0)
    H = whh0_ref.shape[0]

    @pl.when(t == 0)
    def _init():
        hn_ref[...] = jnp.zeros_like(hn_ref)
        cn_ref[...] = jnp.zeros_like(cn_ref)

    valid = t < len_ref[...]                                 # (B, 1) — pack_padded mask
    x_t = x_ref[0]                                           # (B, C)

    def cell(inp, h_prev, c_prev, wih, whh, bias):
        gates = (jnp.dot(inp, wih, preferred_element_type=jnp.float32)
                 + jnp.dot(h_prev, whh, preferred_element_type=jnp.float32)
                 + bias)                                     # (B, 4H)
        i = jax.nn.sigmoid(gates[:, 0 * H:1 * H])
        f = jax.nn.sigmoid(gates[:, 1 * H:2 * H])
        g = jnp.tanh(gates[:, 2 * H:3 * H])
        o = jax.nn.sigmoid(gates[:, 3 * H:4 * H])
        c_new = f * c_prev + i * g
        h_new = o * jnp.tanh(c_new)
        return h_new, c_new

    # ---- layer 0 ----
    h0, c0 = hn_ref[0], cn_ref[0]
    h0n, c0n = cell(x_t, h0, c0, wih0_ref[...], whh0_ref[...], b0_ref[...])
    h0u = jnp.where(valid, h0n, h0)
    c0u = jnp.where(valid, c0n, c0)
    hn_ref[0] = h0u
    cn_ref[0] = c0u

    # ---- layer 1 (input = layer-0 hidden at this step; dropout omitted, eval mode) ----
    h1, c1 = hn_ref[1], cn_ref[1]
    h1n, c1n = cell(h0u, h1, c1, wih1_ref[...], whh1_ref[...], b1_ref[...])
    hn_ref[1] = jnp.where(valid, h1n, h1)
    cn_ref[1] = jnp.where(valid, c1n, c1)


def lstm2_final_state(x, lengths, wih0, whh0, b0, wih1, whh1, b1):
    """x: (B, S, C), lengths: (B,) -> (h_n, c_n) each (2, B, H)."""
    B, S, C = x.shape
    H = whh0.shape[0]
    x_tmajor = jnp.transpose(x, (1, 0, 2))                   # (S, B, C): per-step block
    len2d = lengths.reshape(B, 1).astype(jnp.int32)          #   equals full trailing dims
    hn, cn = pl.pallas_call(
        _lstm2_kernel,
        out_shape=(jax.ShapeDtypeStruct((2, B, H), jnp.float32),
                   jax.ShapeDtypeStruct((2, B, H), jnp.float32)),
        grid=(S,),
        in_specs=[
            pl.BlockSpec((1, B, C), lambda t: (t, 0, 0)),    # one timestep per grid step
            pl.BlockSpec((B, 1), lambda t: (0, 0)),          # resident
            pl.BlockSpec((C, 4 * H), lambda t: (0, 0)),      # resident weights
            pl.BlockSpec((H, 4 * H), lambda t: (0, 0)),
            pl.BlockSpec((1, 4 * H), lambda t: (0, 0)),
            pl.BlockSpec((H, 4 * H), lambda t: (0, 0)),
            pl.BlockSpec((H, 4 * H), lambda t: (0, 0)),
            pl.BlockSpec((1, 4 * H), lambda t: (0, 0)),
        ],
        out_specs=(pl.BlockSpec((2, B, H), lambda t: (0, 0, 0)),
                   pl.BlockSpec((2, B, H), lambda t: (0, 0, 0))),
        compiler_params=pltpu.CompilerParams(dimension_semantics=("arbitrary",)),
    )(x_tmajor, len2d, wih0, whh0, b0, wih1, whh1, b1)
    return hn, cn


# ----------------------------------------------------------------------------
# Encoder.forward (post-CNN part): returns (conv1d output, (h_n, c_n))
# ----------------------------------------------------------------------------
@jax.jit
def encoder_forward(x, lengths,
                    conv_w_prev, conv_w_cur, conv_w_next, conv_b,
                    wih0, whh0, b0, wih1, whh1, b1):
    output = conv1d_seq(x, conv_w_prev, conv_w_cur, conv_w_next, conv_b)
    h_n, c_n = lstm2_final_state(x, lengths, wih0, whh0, b0, wih1, whh1, b1)
    return output, (h_n, c_n)


# ----------------------------------------------------------------------------
# Pure-JAX references
# ----------------------------------------------------------------------------
def _conv1d_ref(x, w_prev, w_cur, w_next, b):
    xp = jnp.pad(x, ((0, 0), (1, 1), (0, 0)))
    return (jnp.einsum("bsc,co->bso", xp[:, :-2, :], w_prev)
            + jnp.einsum("bsc,co->bso", xp[:, 1:-1, :], w_cur)
            + jnp.einsum("bsc,co->bso", xp[:, 2:, :], w_next)
            + b)


def _lstm2_ref(x, lengths, wih0, whh0, b0, wih1, whh1, b1):
    B, S, _ = x.shape
    H = whh0.shape[0]

    def cell(inp, hp, cp, wih, whh, bias):
        g = inp @ wih + hp @ whh + bias
        i = jax.nn.sigmoid(g[:, 0:H])
        f = jax.nn.sigmoid(g[:, H:2 * H])
        gg = jnp.tanh(g[:, 2 * H:3 * H])
        o = jax.nn.sigmoid(g[:, 3 * H:4 * H])
        cn = f * cp + i * gg
        return o * jnp.tanh(cn), cn

    h0 = jnp.zeros((B, H)); c0 = jnp.zeros((B, H))
    h1 = jnp.zeros((B, H)); c1 = jnp.zeros((B, H))
    for t in range(S):
        valid = (t < lengths)[:, None]
        h0n, c0n = cell(x[:, t, :], h0, c0, wih0, whh0, b0)
        h0 = jnp.where(valid, h0n, h0); c0 = jnp.where(valid, c0n, c0)
        h1n, c1n = cell(h0, h1, c1, wih1, whh1, b1)
        h1 = jnp.where(valid, h1n, h1); c1 = jnp.where(valid, c1n, c1)
    return jnp.stack([h0, h1]), jnp.stack([c0, c1])


if __name__ == "__main__":
    B, S = 2, 8
    HIDDEN = 32            # hidden_dim (small demo value)
    CNN_DIM = 32           # cnn_output_dim (defaults to hidden_dim in the module)
    CONV_DIM = 26          # convld_dim default

    key = jax.random.PRNGKey(0)
    ks = jax.random.split(key, 12)
    s = 0.1

    # CNN feature output (see TODO at top) and per-sequence lengths
    x = jax.random.normal(ks[0], (B, S, CNN_DIM), dtype=jnp.float32)
    lengths = jnp.array([S, 5], dtype=jnp.int32)

    conv_w_prev = s * jax.random.normal(ks[1], (CNN_DIM, CONV_DIM), jnp.float32)
    conv_w_cur  = s * jax.random.normal(ks[2], (CNN_DIM, CONV_DIM), jnp.float32)
    conv_w_next = s * jax.random.normal(ks[3], (CNN_DIM, CONV_DIM), jnp.float32)
    conv_b      = s * jax.random.normal(ks[4], (1, CONV_DIM), jnp.float32)

    wih0 = s * jax.random.normal(ks[5], (CNN_DIM, 4 * HIDDEN), jnp.float32)
    whh0 = s * jax.random.normal(ks[6], (HIDDEN, 4 * HIDDEN), jnp.float32)
    b0   = s * jax.random.normal(ks[7], (1, 4 * HIDDEN), jnp.float32)
    wih1 = s * jax.random.normal(ks[8], (HIDDEN, 4 * HIDDEN), jnp.float32)
    whh1 = s * jax.random.normal(ks[9], (HIDDEN, 4 * HIDDEN), jnp.float32)
    b1   = s * jax.random.normal(ks[10], (1, 4 * HIDDEN), jnp.float32)

    output, (h_n, c_n) = encoder_forward(
        x, lengths, conv_w_prev, conv_w_cur, conv_w_next, conv_b,
        wih0, whh0, b0, wih1, whh1, b1)
    output = jax.block_until_ready(output)
    h_n = jax.block_until_ready(h_n)
    c_n = jax.block_until_ready(c_n)

    # Pure-JAX reference check
    out_ref = _conv1d_ref(x, conv_w_prev, conv_w_cur, conv_w_next, conv_b)
    h_ref, c_ref = _lstm2_ref(x, lengths, wih0, whh0, b0, wih1, whh1, b1)

    assert output.shape == (B, S, CONV_DIM)
    assert h_n.shape == (2, B, HIDDEN) and c_n.shape == (2, B, HIDDEN)
    assert jnp.allclose(output, out_ref, atol=2e-3, rtol=2e-3)
    assert jnp.allclose(h_n, h_ref, atol=2e-3, rtol=2e-3)
    assert jnp.allclose(c_n, c_ref, atol=2e-3, rtol=2e-3)

    print("KERNEL_OK")
</pallas_src>

<mosaic_0001>
module attributes {stable_mosaic.version = 11 : i64} {
  func.func @_conv1d_seq_kernel(%arg0: i32, %arg1: memref<1x10x32xf32, #tpu.memory_space<vmem>>, %arg2: memref<32x26xf32, #tpu.memory_space<vmem>>, %arg3: memref<32x26xf32, #tpu.memory_space<vmem>>, %arg4: memref<32x26xf32, #tpu.memory_space<vmem>>, %arg5: memref<1x26xf32, #tpu.memory_space<vmem>>, %arg6: memref<1x8x26xf32, #tpu.memory_space<vmem>>) attributes {dimension_semantics = [#tpu.dimension_semantics<parallel>], iteration_bounds = array<i64: 2>, scalar_prefetch = 0 : i64, scratch_operands = 0 : i64, tpu.core_type = #tpu.core_type<tc>, window_params = [{transform_indices = @transform_0, window_bounds = array<i64: 1, 10, 32>}, {pipeline_mode = #tpu.pipeline_mode<synchronous>, transform_indices = @transform_1, window_bounds = array<i64: 32, 26>}, {pipeline_mode = #tpu.pipeline_mode<synchronous>, transform_indices = @transform_2, window_bounds = array<i64: 32, 26>}, {pipeline_mode = #tpu.pipeline_mode<synchronous>, transform_indices = @transform_3, window_bounds = array<i64: 32, 26>}, {pipeline_mode = #tpu.pipeline_mode<synchronous>, transform_indices = @transform_4, window_bounds = array<i64: 1, 26>}, {transform_indices = @transform_5, window_bounds = array<i64: 1, 8, 26>}]} {
    %c0 = arith.constant 0 : index
    %c0_0 = arith.constant 0 : index
    %c0_1 = arith.constant 0 : index
    %0 = vector.load %arg1[%c0, %c0_0, %c0_1] : memref<1x10x32xf32, #tpu.memory_space<vmem>>, vector<1x10x32xf32>
    %1 = vector.shape_cast %0 : vector<1x10x32xf32> to vector<10x32xf32>
    %2 = vector.extract_strided_slice %1 {offsets = [0, 0], sizes = [8, 32], strides = [1, 1]} : vector<10x32xf32> to vector<8x32xf32>
    %c0_2 = arith.constant 0 : index
    %c0_3 = arith.constant 0 : index
    %3 = vector.load %arg2[%c0_2, %c0_3] : memref<32x26xf32, #tpu.memory_space<vmem>>, vector<32x26xf32>
    %cst = arith.constant dense<0.000000e+00> : vector<8x26xf32>
    %4 = tpu.matmul %2, %3, %cst {dimension_numbers = #tpu.dot_dimension_numbers<[1], [0], [0], [1], [0, 0, 1, 1], [], []>} : vector<8x32xf32>, vector<32x26xf32>, vector<8x26xf32> -> vector<8x26xf32>
    %5 = vector.extract_strided_slice %1 {offsets = [1, 0], sizes = [8, 32], strides = [1, 1]} : vector<10x32xf32> to vector<8x32xf32>
    %c0_4 = arith.constant 0 : index
    %c0_5 = arith.constant 0 : index
    %6 = vector.load %arg3[%c0_4, %c0_5] : memref<32x26xf32, #tpu.memory_space<vmem>>, vector<32x26xf32>
    %cst_6 = arith.constant dense<0.000000e+00> : vector<8x26xf32>
    %7 = tpu.matmul %5, %6, %cst_6 {dimension_numbers = #tpu.dot_dimension_numbers<[1], [0], [0], [1], [0, 0, 1, 1], [], []>} : vector<8x32xf32>, vector<32x26xf32>, vector<8x26xf32> -> vector<8x26xf32>
    %8 = arith.addf %4, %7 : vector<8x26xf32>
    %9 = vector.extract_strided_slice %1 {offsets = [2, 0], sizes = [8, 32], strides = [1, 1]} : vector<10x32xf32> to vector<8x32xf32>
    %c0_7 = arith.constant 0 : index
    %c0_8 = arith.constant 0 : index
    %10 = vector.load %arg4[%c0_7, %c0_8] : memref<32x26xf32, #tpu.memory_space<vmem>>, vector<32x26xf32>
    %cst_9 = arith.constant dense<0.000000e+00> : vector<8x26xf32>
    %11 = tpu.matmul %9, %10, %cst_9 {dimension_numbers = #tpu.dot_dimension_numbers<[1], [0], [0], [1], [0, 0, 1, 1], [], []>} : vector<8x32xf32>, vector<32x26xf32>, vector<8x26xf32> -> vector<8x26xf32>
    %12 = arith.addf %8, %11 : vector<8x26xf32>
    %c0_10 = arith.constant 0 : index
    %c0_11 = arith.constant 0 : index
    %13 = vector.load %arg5[%c0_10, %c0_11] : memref<1x26xf32, #tpu.memory_space<vmem>>, vector<1x26xf32>
    %14 = vector.broadcast %13 : vector<1x26xf32> to vector<8x26xf32>
    %15 = arith.addf %12, %14 : vector<8x26xf32>
    %c0_12 = arith.constant 0 : index
    %c0_13 = arith.constant 0 : index
    %c0_14 = arith.constant 0 : index
    %16 = vector.load %arg6[%c0_12, %c0_13, %c0_14] : memref<1x8x26xf32, #tpu.memory_space<vmem>>, vector<1x8x26xf32>
    %17 = vector.shape_cast %16 : vector<1x8x26xf32> to vector<8x26xf32>
    %18 = vector.shape_cast %15 : vector<8x26xf32> to vector<1x8x26xf32>
    tpu.vector_store %arg6[%c0_12, %c0_13, %c0_14], %18 {strides = array<i32>} : memref<1x8x26xf32, #tpu.memory_space<vmem>>, vector<1x8x26xf32>,
    return
  }
  func.func @transform_0(%arg0: i32) -> (i32, i32, i32) {
    %c0_i32 = arith.constant 0 : i32
    %c0_i32_0 = arith.constant 0 : i32
    %c0_i32_1 = arith.constant 0 : i32
    return %arg0, %c0_i32, %c0_i32_0 : i32, i32, i32
  }
  func.func @transform_1(%arg0: i32) -> (i32, i32) {
    %c0_i32 = arith.constant 0 : i32
    %c0_i32_0 = arith.constant 0 : i32
    %c0_i32_1 = arith.constant 0 : i32
    return %c0_i32, %c0_i32_0 : i32, i32
  }
  func.func @transform_2(%arg0: i32) -> (i32, i32) {
    %c0_i32 = arith.constant 0 : i32
    %c0_i32_0 = arith.constant 0 : i32
    %c0_i32_1 = arith.constant 0 : i32
    return %c0_i32, %c0_i32_0 : i32, i32
  }
  func.func @transform_3(%arg0: i32) -> (i32, i32) {
    %c0_i32 = arith.constant 0 : i32
    %c0_i32_0 = arith.constant 0 : i32
    %c0_i32_1 = arith.constant 0 : i32
    return %c0_i32, %c0_i32_0 : i32, i32
  }
  func.func @transform_4(%arg0: i32) -> (i32, i32) {
    %c0_i32 = arith.constant 0 : i32
    %c0_i32_0 = arith.constant 0 : i32
    %c0_i32_1 = arith.constant 0 : i32
    return %c0_i32, %c0_i32_0 : i32, i32
  }
  func.func @transform_5(%arg0: i32) -> (i32, i32, i32) {
    %c0_i32 = arith.constant 0 : i32
    %c0_i32_0 = arith.constant 0 : i32
    %c0_i32_1 = arith.constant 0 : i32
    return %arg0, %c0_i32, %c0_i32_0 : i32, i32, i32
  }
}

module attributes {stable_mosaic.version = 11 : i64} {
  func.func @_lstm2_kernel(%arg0: i32, %arg1: memref<1x2x32xf32, #tpu.memory_space<vmem>>, %arg2: memref<2x1xi32, #tpu.memory_space<vmem>>, %arg3: memref<32x128xf32, #tpu.memory_space<vmem>>, %arg4: memref<32x128xf32, #tpu.memory_space<vmem>>, %arg5: memref<1x128xf32, #tpu.memory_space<vmem>>, %arg6: memref<32x128xf32, #tpu.memory_space<vmem>>, %arg7: memref<32x128xf32, #tpu.memory_space<vmem>>, %arg8: memref<1x128xf32, #tpu.memory_space<vmem>>, %arg9: memref<2x2x32xf32, #tpu.memory_space<vmem>>, %arg10: memref<2x2x32xf32, #tpu.memory_space<vmem>>) attributes {dimension_semantics = [#tpu.dimension_semantics<arbitrary>], iteration_bounds = array<i64: 8>, scalar_prefetch = 0 : i64, scratch_operands = 0 : i64, tpu.core_type = #tpu.core_type<tc>, window_params = [{transform_indices = @transform_0, window_bounds = array<i64: 1, 2, 32>}, {pipeline_mode = #tpu.pipeline_mode<synchronous>, transform_indices = @transform_1, window_bounds = array<i64: 2, 1>}, {pipeline_mode = #tpu.pipeline_mode<synchronous>, transform_indices = @transform_2, window_bounds = array<i64: 32, 128>}, {pipeline_mode = #tpu.pipeline_mode<synchronous>, transform_indices = @transform_3, window_bounds = array<i64: 32, 128>}, {pipeline_mode = #tpu.pipeline_mode<synchronous>, transform_indices = @transform_4, window_bounds = array<i64: 1, 128>}, {pipeline_mode = #tpu.pipeline_mode<synchronous>, transform_indices = @transform_5, window_bounds = array<i64: 32, 128>}, {pipeline_mode = #tpu.pipeline_mode<synchronous>, transform_indices = @transform_6, window_bounds = array<i64: 32, 128>}, {pipeline_mode = #tpu.pipeline_mode<synchronous>, transform_indices = @transform_7, window_bounds = array<i64: 1, 128>}, {pipeline_mode = #tpu.pipeline_mode<synchronous>, transform_indices = @transform_8, window_bounds = array<i64: 2, 2, 32>}, {pipeline_mode = #tpu.pipeline_mode<synchronous>, transform_indices = @transform_9, window_bounds = array<i64: 2, 2, 32>}]} {
    %c0_i32 = arith.constant 0 : i32
    %0 = arith.cmpi eq, %arg0, %c0_i32 : i32
    %1 = arith.extui %0 : i1 to i32
    %c0_i32_0 = arith.constant 0 : i32
    %2 = arith.cmpi ne, %1, %c0_i32_0 : i32
    scf.if %2 {
      %cst_49 = arith.constant 0.000000e+00 : f32
      %106 = vector.broadcast %cst_49 : f32 to vector<2x2x32xf32>
      %c0_50 = arith.constant 0 : index
      %c0_51 = arith.constant 0 : index
      %c0_52 = arith.constant 0 : index
      %107 = vector.load %arg9[%c0_50, %c0_51, %c0_52] : memref<2x2x32xf32, #tpu.memory_space<vmem>>, vector<2x2x32xf32>
      tpu.vector_store %arg9[%c0_50, %c0_51, %c0_52], %106 {strides = array<i32>} : memref<2x2x32xf32, #tpu.memory_space<vmem>>, vector<2x2x32xf32>,
      %cst_53 = arith.constant 0.000000e+00 : f32
      %108 = vector.broadcast %cst_53 : f32 to vector<2x2x32xf32>
      %c0_54 = arith.constant 0 : index
      %c0_55 = arith.constant 0 : index
      %c0_56 = arith.constant 0 : index
      %109 = vector.load %arg10[%c0_54, %c0_55, %c0_56] : memref<2x2x32xf32, #tpu.memory_space<vmem>>, vector<2x2x32xf32>
      tpu.vector_store %arg10[%c0_54, %c0_55, %c0_56], %108 {strides = array<i32>} : memref<2x2x32xf32, #tpu.memory_space<vmem>>, vector<2x2x32xf32>,
    } else {
    }
    %c0 = arith.constant 0 : index
    %c0_1 = arith.constant 0 : index
    %3 = vector.load %arg2[%c0, %c0_1] : memref<2x1xi32, #tpu.memory_space<vmem>>, vector<2x1xi32>
    %4 = vector.broadcast %arg0 : i32 to vector<2x1xi32>
    %5 = arith.cmpi slt, %4, %3 : vector<2x1xi32>
    %c0_2 = arith.constant 0 : index
    %c0_3 = arith.constant 0 : index
    %c0_4 = arith.constant 0 : index
    %6 = vector.load %arg1[%c0_2, %c0_3, %c0_4] : memref<1x2x32xf32, #tpu.memory_space<vmem>>, vector<1x2x32xf32>
    %7 = vector.shape_cast %6 : vector<1x2x32xf32> to vector<2x32xf32>
    %c0_5 = arith.constant 0 : index
    %c0_6 = arith.constant 0 : index
    %c0_7 = arith.constant 0 : index
    %8 = vector.load %arg9[%c0_5, %c0_6, %c0_7] : memref<2x2x32xf32, #tpu.memory_space<vmem>>, vector<1x2x32xf32>
    %9 = vector.shape_cast %8 : vector<1x2x32xf32> to vector<2x32xf32>
    %c0_8 = arith.constant 0 : index
    %c0_9 = arith.constant 0 : index
    %c0_10 = arith.constant 0 : index
    %10 = vector.load %arg10[%c0_8, %c0_9, %c0_10] : memref<2x2x32xf32, #tpu.memory_space<vmem>>, vector<1x2x32xf32>
    %11 = vector.shape_cast %10 : vector<1x2x32xf32> to vector<2x32xf32>
    %c0_11 = arith.constant 0 : index
    %c0_12 = arith.constant 0 : index
    %12 = vector.load %arg3[%c0_11, %c0_12] : memref<32x128xf32, #tpu.memory_space<vmem>>, vector<32x128xf32>
    %c0_13 = arith.constant 0 : index
    %c0_14 = arith.constant 0 : index
    %13 = vector.load %arg4[%c0_13, %c0_14] : memref<32x128xf32, #tpu.memory_space<vmem>>, vector<32x128xf32>
    %c0_15 = arith.constant 0 : index
    %c0_16 = arith.constant 0 : index
    %14 = vector.load %arg5[%c0_15, %c0_16] : memref<1x128xf32, #tpu.memory_space<vmem>>, vector<1x128xf32>
    %cst = arith.constant dense<0.000000e+00> : vector<2x128xf32>
    %15 = tpu.matmul %7, %12, %cst {dimension_numbers = #tpu.dot_dimension_numbers<[1], [0], [0], [1], [0, 0, 1, 1], [], []>} : vector<2x32xf32>, vector<32x128xf32>, vector<2x128xf32> -> vector<2x128xf32>
    %cst_17 = arith.constant dense<0.000000e+00> : vector<2x128xf32>
    %16 = tpu.matmul %9, %13, %cst_17 {dimension_numbers = #tpu.dot_dimension_numbers<[1], [0], [0], [1], [0, 0, 1, 1], [], []>} : vector<2x32xf32>, vector<32x128xf32>, vector<2x128xf32> -> vector<2x128xf32>
    %17 = arith.addf %15, %16 : vector<2x128xf32>
    %18 = vector.broadcast %14 : vector<1x128xf32> to vector<2x128xf32>
    %19 = arith.addf %17, %18 : vector<2x128xf32>
    %20 = vector.extract_strided_slice %19 {offsets = [0, 0], sizes = [2, 32], strides = [1, 1]} : vector<2x128xf32> to vector<2x32xf32>
    %21 = arith.negf %20 : vector<2x32xf32>
    %22 = math.exp %21 : vector<2x32xf32>
    %cst_18 = arith.constant 1.000000e+00 : f32
    %23 = vector.broadcast %cst_18 : f32 to vector<2x32xf32>
    %24 = arith.addf %23, %22 : vector<2x32xf32>
    %25 = arith.divf %23, %24 : vector<2x32xf32>
    %26 = vector.extract_strided_slice %19 {offsets = [0, 32], sizes = [2, 32], strides = [1, 1]} : vector<2x128xf32> to vector<2x32xf32>
    %27 = arith.negf %26 : vector<2x32xf32>
    %28 = math.exp %27 : vector<2x32xf32>
    %cst_19 = arith.constant 1.000000e+00 : f32
    %29 = vector.broadcast %cst_19 : f32 to vector<2x32xf32>
    %30 = arith.addf %29, %28 : vector<2x32xf32>
    %31 = arith.divf %29, %30 : vector<2x32xf32>
    %32 = vector.extract_strided_slice %19 {offsets = [0, 64], sizes = [2, 32], strides = [1, 1]} : vector<2x128xf32> to vector<2x32xf32>
    %33 = math.tanh %32 : vector<2x32xf32>
    %34 = vector.extract_strided_slice %19 {offsets = [0, 96], sizes = [2, 32], strides = [1, 1]} : vector<2x128xf32> to vector<2x32xf32>
    %35 = arith.negf %34 : vector<2x32xf32>
    %36 = math.exp %35 : vector<2x32xf32>
    %cst_20 = arith.constant 1.000000e+00 : f32
    %37 = vector.broadcast %cst_20 : f32 to vector<2x32xf32>
    %38 = arith.addf %37, %36 : vector<2x32xf32>
    %39 = arith.divf %37, %38 : vector<2x32xf32>
    %40 = arith.mulf %31, %11 : vector<2x32xf32>
    %41 = arith.mulf %25, %33 : vector<2x32xf32>
    %42 = arith.addf %40, %41 : vector<2x32xf32>
    %43 = math.tanh %42 : vector<2x32xf32>
    %44 = arith.mulf %39, %43 : vector<2x32xf32>
    %45 = vector.shape_cast %5 : vector<2x1xi1> to vector<2x1xi1>
    %46 = vector.broadcast %45 : vector<2x1xi1> to vector<2x32xi1>
    %47 = arith.select %46, %44, %9 : vector<2x32xi1>, vector<2x32xf32>
    %48 = vector.shape_cast %5 : vector<2x1xi1> to vector<2x1xi1>
    %49 = vector.broadcast %48 : vector<2x1xi1> to vector<2x32xi1>
    %50 = arith.select %49, %42, %11 : vector<2x32xi1>, vector<2x32xf32>
    %c0_21 = arith.constant 0 : index
    %c0_22 = arith.constant 0 : index
    %c0_23 = arith.constant 0 : index
    %51 = vector.load %arg9[%c0_21, %c0_22, %c0_23] : memref<2x2x32xf32, #tpu.memory_space<vmem>>, vector<1x2x32xf32>
    %52 = vector.shape_cast %51 : vector<1x2x32xf32> to vector<2x32xf32>
    %53 = vector.shape_cast %47 : vector<2x32xf32> to vector<1x2x32xf32>
    tpu.vector_store %arg9[%c0_21, %c0_22, %c0_23], %53 {strides = array<i32>} : memref<2x2x32xf32, #tpu.memory_space<vmem>>, vector<1x2x32xf32>,
    %c0_24 = arith.constant 0 : index
    %c0_25 = arith.constant 0 : index
    %c0_26 = arith.constant 0 : index
    %54 = vector.load %arg10[%c0_24, %c0_25, %c0_26] : memref<2x2x32xf32, #tpu.memory_space<vmem>>, vector<1x2x32xf32>
    %55 = vector.shape_cast %54 : vector<1x2x32xf32> to vector<2x32xf32>
    %56 = vector.shape_cast %50 : vector<2x32xf32> to vector<1x2x32xf32>
    tpu.vector_store %arg10[%c0_24, %c0_25, %c0_26], %56 {strides = array<i32>} : memref<2x2x32xf32, #tpu.memory_space<vmem>>, vector<1x2x32xf32>,
    %c1 = arith.constant 1 : index
    %c0_27 = arith.constant 0 : index
    %c0_28 = arith.constant 0 : index
    %57 = vector.load %arg9[%c1, %c0_27, %c0_28] : memref<2x2x32xf32, #tpu.memory_space<vmem>>, vector<1x2x32xf32>
    %58 = vector.shape_cast %57 : vector<1x2x32xf32> to vector<2x32xf32>
    %c1_29 = arith.constant 1 : index
    %c0_30 = arith.constant 0 : index
    %c0_31 = arith.constant 0 : index
    %59 = vector.load %arg10[%c1_29, %c0_30, %c0_31] : memref<2x2x32xf32, #tpu.memory_space<vmem>>, vector<1x2x32xf32>
    %60 = vector.shape_cast %59 : vector<1x2x32xf32> to vector<2x32xf32>
    %c0_32 = arith.constant 0 : index
    %c0_33 = arith.constant 0 : index
    %61 = vector.load %arg6[%c0_32, %c0_33] : memref<32x128xf32, #tpu.memory_space<vmem>>, vector<32x128xf32>
    %c0_34 = arith.constant 0 : index
    %c0_35 = arith.constant 0 : index
    %62 = vector.load %arg7[%c0_34, %c0_35] : memref<32x128xf32, #tpu.memory_space<vmem>>, vector<32x128xf32>
    %c0_36 = arith.constant 0 : index
    %c0_37 = arith.constant 0 : index
    %63 = vector.load %arg8[%c0_36, %c0_37] : memref<1x128xf32, #tpu.memory_space<vmem>>, vector<1x128xf32>
    %cst_38 = arith.constant dense<0.000000e+00> : vector<2x128xf32>
    %64 = tpu.matmul %47, %61, %cst_38 {dimension_numbers = #tpu.dot_dimension_numbers<[1], [0], [0], [1], [0, 0, 1, 1], [], []>} : vector<2x32xf32>, vector<32x128xf32>, vector<2x128xf32> -> vector<2x128xf32>
    %cst_39 = arith.constant dense<0.000000e+00> : vector<2x128xf32>
    %65 = tpu.matmul %58, %62, %cst_39 {dimension_numbers = #tpu.dot_dimension_numbers<[1], [0], [0], [1], [0, 0, 1, 1], [], []>} : vector<2x32xf32>, vector<32x128xf32>, vector<2x128xf32> -> vector<2x128xf32>
    %66 = arith.addf %64, %65 : vector<2x128xf32>
    %67 = vector.broadcast %63 : vector<1x128xf32> to vector<2x128xf32>
    %68 = arith.addf %66, %67 : vector<2x128xf32>
    %69 = vector.extract_strided_slice %68 {offsets = [0, 0], sizes = [2, 32], strides = [1, 1]} : vector<2x128xf32> to vector<2x32xf32>
    %70 = arith.negf %69 : vector<2x32xf32>
    %71 = math.exp %70 : vector<2x32xf32>
    %cst_40 = arith.constant 1.000000e+00 : f32
    %72 = vector.broadcast %cst_40 : f32 to vector<2x32xf32>
    %73 = arith.addf %72, %71 : vector<2x32xf32>
    %74 = arith.divf %72, %73 : vector<2x32xf32>
    %75 = vector.extract_strided_slice %68 {offsets = [0, 32], sizes = [2, 32], strides = [1, 1]} : vector<2x128xf32> to vector<2x32xf32>
    %76 = arith.negf %75 : vector<2x32xf32>
    %77 = math.exp %76 : vector<2x32xf32>
    %cst_41 = arith.constant 1.000000e+00 : f32
    %78 = vector.broadcast %cst_41 : f32 to vector<2x32xf32>
    %79 = arith.addf %78, %77 : vector<2x32xf32>
    %80 = arith.divf %78, %79 : vector<2x32xf32>
    %81 = vector.extract_strided_slice %68 {offsets = [0, 64], sizes = [2, 32], strides = [1, 1]} : vector<2x128xf32> to vector<2x32xf32>
    %82 = math.tanh %81 : vector<2x32xf32>
    %83 = vector.extract_strided_slice %68 {offsets = [0, 96], sizes = [2, 32], strides = [1, 1]} : vector<2x128xf32> to vector<2x32xf32>
    %84 = arith.negf %83 : vector<2x32xf32>
    %85 = math.exp %84 : vector<2x32xf32>
    %cst_42 = arith.constant 1.000000e+00 : f32
    %86 = vector.broadcast %cst_42 : f32 to vector<2x32xf32>
    %87 = arith.addf %86, %85 : vector<2x32xf32>
    %88 = arith.divf %86, %87 : vector<2x32xf32>
    %89 = arith.mulf %80, %60 : vector<2x32xf32>
    %90 = arith.mulf %74, %82 : vector<2x32xf32>
    %91 = arith.addf %89, %90 : vector<2x32xf32>
    %92 = math.tanh %91 : vector<2x32xf32>
    %93 = arith.mulf %88, %92 : vector<2x32xf32>
    %94 = vector.shape_cast %5 : vector<2x1xi1> to vector<2x1xi1>
    %95 = vector.broadcast %94 : vector<2x1xi1> to vector<2x32xi1>
    %96 = arith.select %95, %93, %58 : vector<2x32xi1>, vector<2x32xf32>
    %c1_43 = arith.constant 1 : index
    %c0_44 = arith.constant 0 : index
    %c0_45 = arith.constant 0 : index
    %97 = vector.load %arg9[%c1_43, %c0_44, %c0_45] : memref<2x2x32xf32, #tpu.memory_space<vmem>>, vector<1x2x32xf32>
    %98 = vector.shape_cast %97 : vector<1x2x32xf32> to vector<2x32xf32>
    %99 = vector.shape_cast %96 : vector<2x32xf32> to vector<1x2x32xf32>
    tpu.vector_store %arg9[%c1_43, %c0_44, %c0_45], %99 {strides = array<i32>} : memref<2x2x32xf32, #tpu.memory_space<vmem>>, vector<1x2x32xf32>,
    %100 = vector.shape_cast %5 : vector<2x1xi1> to vector<2x1xi1>
    %101 = vector.broadcast %100 : vector<2x1xi1> to vector<2x32xi1>
    %102 = arith.select %101, %91, %60 : vector<2x32xi1>, vector<2x32xf32>
    %c1_46 = arith.constant 1 : index
    %c0_47 = arith.constant 0 : index
    %c0_48 = arith.constant 0 : index
    %103 = vector.load %arg10[%c1_46, %c0_47, %c0_48] : memref<2x2x32xf32, #tpu.memory_space<vmem>>, vector<1x2x32xf32>
    %104 = vector.shape_cast %103 : vector<1x2x32xf32> to vector<2x32xf32>
    %105 = vector.shape_cast %102 : vector<2x32xf32> to vector<1x2x32xf32>
    tpu.vector_store %arg10[%c1_46, %c0_47, %c0_48], %105 {strides = array<i32>} : memref<2x2x32xf32, #tpu.memory_space<vmem>>, vector<1x2x32xf32>,
    return
  }
  func.func @transform_0(%arg0: i32) -> (i32, i32, i32) {
    %c0_i32 = arith.constant 0 : i32
    %c0_i32_0 = arith.constant 0 : i32
    %c0_i32_1 = arith.constant 0 : i32
    return %arg0, %c0_i32, %c0_i32_0 : i32, i32, i32
  }
  func.func @transform_1(%arg0: i32) -> (i32, i32) {
    %c0_i32 = arith.constant 0 : i32
    %c0_i32_0 = arith.constant 0 : i32
    %c0_i32_1 = arith.constant 0 : i32
    return %c0_i32, %c0_i32_0 : i32, i32
  }
  func.func @transform_2(%arg0: i32) -> (i32, i32) {
    %c0_i32 = arith.constant 0 : i32
    %c0_i32_0 = arith.constant 0 : i32
    %c0_i32_1 = arith.constant 0 : i32
    return %c0_i32, %c0_i32_0 : i32, i32
  }
  func.func @transform_3(%arg0: i32) -> (i32, i32) {
    %c0_i32 = arith.constant 0 : i32
    %c0_i32_0 = arith.constant 0 : i32
    %c0_i32_1 = arith.constant 0 : i32
    return %c0_i32, %c0_i32_0 : i32, i32
  }
  func.func @transform_4(%arg0: i32) -> (i32, i32) {
    %c0_i32 = arith.constant 0 : i32
    %c0_i32_0 = arith.constant 0 : i32
    %c0_i32_1 = arith.constant 0 : i32
    return %c0_i32, %c0_i32_0 : i32, i32
  }
  func.func @transform_5(%arg0: i32) -> (i32, i32) {
    %c0_i32 = arith.constant 0 : i32
    %c0_i32_0 = arith.constant 0 : i32
    %c0_i32_1 = arith.constant 0 : i32
    return %c0_i32, %c0_i32_0 : i32, i32
  }
  func.func @transform_6(%arg0: i32) -> (i32, i32) {
    %c0_i32 = arith.constant 0 : i32
    %c0_i32_0 = arith.constant 0 : i32
    %c0_i32_1 = arith.constant 0 : i32
    return %c0_i32, %c0_i32_0 : i32, i32
  }
  func.func @transform_7(%arg0: i32) -> (i32, i32) {
    %c0_i32 = arith.constant 0 : i32
    %c0_i32_0 = arith.constant 0 : i32
    %c0_i32_1 = arith.constant 0 : i32
    return %c0_i32, %c0_i32_0 : i32, i32
  }
  func.func @transform_8(%arg0: i32) -> (i32, i32, i32) {
    %c0_i32 = arith.constant 0 : i32
    %c0_i32_0 = arith.constant 0 : i32
    %c0_i32_1 = arith.constant 0 : i32
    %c0_i32_2 = arith.constant 0 : i32
    return %c0_i32, %c0_i32_0, %c0_i32_1 : i32, i32, i32
  }
  func.func @transform_9(%arg0: i32) -> (i32, i32, i32) {
    %c0_i32 = arith.constant 0 : i32
    %c0_i32_0 = arith.constant 0 : i32
    %c0_i32_1 = arith.constant 0 : i32
    %c0_i32_2 = arith.constant 0 : i32
    return %c0_i32, %c0_i32_0, %c0_i32_1 : i32, i32, i32
  }
}

</mosaic_0001>

<bundles_post_ra>
// kernel: encoder_forward.2
= control target key start
LH: loop header
LB: loop body
LE: loop exit
PB: predicated region body
PF: predicated region fallthrough
CT: control target
= control target key end

     0   :  { %10 = vsyncpa [#allocation3], 0  ;;  %s1110_s0 = inlined_call_operand.vmem [shape: f32[2,10,32], index: 0, kind: input, shape index: {}]   ;;  %s1111_s1 = inlined_call_operand.vmem [shape: f32[32,26], index: 1, kind: input, shape index: {}]   ;;  %s1112_s2 = inlined_call_operand.hbm [shape: f32[32,26], index: 2, kind: input, shape index: {}]   ;;  %s1113_s3 = inlined_call_operand.hbm [shape: f32[32,26], index: 3, kind: input, shape index: {}]   ;;  %s1114_s4 = inlined_call_operand.vmem [shape: f32[1,26], index: 4, kind: input, shape index: {}]   ;;  %s1115_s5 = inlined_call_operand.hbm [shape: f32[2,8,26], index: 5, kind: output, shape index: {}]  }
   0x1   :  { %11 = vsyncpa [#allocation6], 0 }
   0x2   :  { %12 = vsyncpa [#allocation4], 0 }
   0x3   :  { %14 = vsyncpa [#allocation4 + $0x1], 0  ;;  %s917_s18 = smov 0   ;;  %s919_s19 = smov 0  }
   0x4   :  { %s921_s20 = smov 0   ;;  %s923_s21 = smov 0  }
   0x5 LB: > { %s938_s22 = sadd.s32 4294967295, %s877_s21   ;;  %s600_s23 = sadd.s32 4294967294, %s877_s21   ;;  %s877_s21 = sphi %s923_s21, %s1133_s21   ;;  %s873_s20 = sphi %s921_s20, %s1132_s20   ;;  %s869_s19 = sphi %s919_s19, %s1131_s19   ;;  %s865_s18 = sphi %s917_s18, %s1130_s18  }
   0x6   : > { %s942_s24 = sadd.s32 1, %s877_s21   ;;  %s137_s25 = sadd.s32 1, %s873_s20 }
   0x7   : > { %s134_s26 = ssub.s32 %s877_s21, %s942_s24  ;;  %p147_p0 = scmp.ne.s32.totalorder %s873_s20, %s869_s19 }
   0x8   : > { %p135_p1 = scmp.eq.s32.totalorder %s134_s26, 0  ;;  %p148_p2 = scmp.eq.s32.totalorder %s938_s22, 1 }
   0x9   : > { %p153_p3 = scmp.ne.s32.totalorder %s869_s19, %s865_s18  ;;  %p154_p4 = scmp.eq.s32.totalorder %s600_s23, 1 }
   0xa   : > { %s953_s27 = scalar_select %p135_p1, %s873_s20, %s137_s25  }
   0xb   : > { %p955_p5 = por %p148_p2, %p147_p0  ;;  %p959_p6 = por %p154_p4, %p153_p3 }
   0xc   : > { %p601_p7 = scmp.ge.s32.totalorder %s877_s21, 1  ;;  %p161_p8 = scmp.lt.s32.totalorder %s877_s21, 3 }
   0xd   : > { %s1119_s28 = scalar_select %p955_p5, 1, 0 }
   0xe   : > { %s1120_s29 = scalar_select %p959_p6, 1, 0 }
   0xf   : > { %p1116_p9 = scmp.eq.s32.totalorder %s938_s22, 0  ;;  %p966_p10 = pnand %p601_p7, %p161_p8 }
  0x10   : > { %s879_s6 = smov [#allocation2]   ;;  %s880_s9 = smov [#allocation5]  }
  0x11   : > { %s1121_s30 = scalar_select %p966_p10, 1, 0 }
  0x12   : > { %s176_s7 = sshll.u32 %s879_s6, 4  ;;  %p696_p11 = pneg %p966_p10  ;;  %s177_s7 = int_to_ptr.vmem [resolvable:$true] %s176_s7 }
  0x13   : > { %s189_s10 = sshll.u32 %s880_s9, 4  ;;  %s751_s13 = scalar_lea.hbm %s1112_s2, 512  ;;  %s978_s10 = int_to_ptr.vmem [resolvable:$true] %s189_s10 }
  0x14   : > { %p974_p12 = pnand %p1116_p9, %p696_p11  ;;  %p752_p13 = scmp.ne.s32.totalorder %s1112_s2, %s751_s13 }
  0x15   : > { %p758_p3 = scmp.lt.u32.totalorder %s751_s13, %s1112_s2 }
  0x16   : > { %p753_p0 = pneg %p974_p12 }
  0x18   : > { %p754_p1 = pnand %p753_p0, %p752_p13 }
  0x1a   : > { %p755_p2 = pneg %p754_p1 }
  0x1c   : > { %p760_p4 = pnand %p758_p3, %p755_p2 }
  0x1e   : > { %763 = shalt.err (!%p760_p4)
}
  0x1f   : > { %s764_s23 = scalar_lea.vmem %s177_s7, 512  ;;  %p772_p9 = scmp.lt.s32.totalorder %s177_s7, %s177_s7 }
  0x20   : > { %p765_p7 = scmp.ne.s32.totalorder %s177_s7, %s764_s23  ;;  %p773_p6 = scmp.lt.s32.totalorder %s764_s23, %s764_s23 }
  0x22   : > { %p767_p8 = pnand %p765_p7, %p753_p0  ;;  %p774_p5 = por %p773_p6, %p772_p9 }
  0x24   : > { %p768_p11 = pneg %p767_p8 }
  0x26   : > { %p775_p10 = pnand %p774_p5, %p768_p11 }
  0x28   : > { %778 = shalt.err (!%p775_p10)
}
  0x29   : > { %s881_s25 = smov 128   ;;  %s882_s26 = smov 8  }
  0x2a   : > { %699 = dma.hbm_to_vmem [thread:$0]  (!%p974_p12), %s1112_s2, 512, %s177_s7, [#allocation3], %s881_s25, %s881_s25, %s882_s26  }
  0x2b   : > { %s779_s13 = scalar_lea.hbm %s1113_s3, 512 }
  0x2c   : > { %p780_p13 = scmp.ne.s32.totalorder %s1113_s3, %s779_s13  ;;  %p786_p9 = scmp.lt.u32.totalorder %s779_s13, %s1113_s3 }
  0x2e   : > { %p782_p5 = pnand %p780_p13, %p753_p0 }
  0x30   : > { %p783_p6 = pneg %p782_p5 }
  0x32   : > { %p788_p10 = pnand %p786_p9, %p783_p6 }
  0x34   : > { %791 = shalt.err (!%p788_p10)
}
  0x35   : > { %s792_s7 = scalar_lea.vmem %s978_s10, 512  ;;  %p800_p4 = scmp.lt.s32.totalorder %s978_s10, %s978_s10 }
  0x36   : > { %p793_p1 = scmp.ne.s32.totalorder %s978_s10, %s792_s7  ;;  %p801_p7 = scmp.lt.s32.totalorder %s792_s7, %s792_s7 }
  0x38   : > { %p795_p2 = pnand %p793_p1, %p753_p0  ;;  %p802_p8 = por %p801_p7, %p800_p4 }
  0x3a   : > { %p796_p3 = pneg %p795_p2 }
  0x3c   : > { %p803_p11 = pnand %p802_p8, %p796_p3 }
  0x3e   : > { %806 = shalt.err (!%p803_p11)
}
  0x3f   : > { %702 = dma.hbm_to_vmem [thread:$0]  (!%p974_p12), %s1113_s3, 512, %s978_s10, [#allocation6], %s881_s25, %s881_s25, %s882_s26  }
  0x40   : > { %p1123_p13 = scmp.ne.s32.totalorder %s1121_s30, 0 }
  0x41   : > { %p1124_p5 = scmp.eq.s32.totalorder (!%p1123_p13), %s938_s22, 0 }
  0x42   : > { %216 = sbr.rel (%p1123_p13) target bundleno = 327 (0x147), region = 40 }
  0x49   : > { %852 = dma.done.wait (%p1124_p5), [#allocation3], 512   ;;  %p1125_p0 = pmov %p1124_p5 }
  0x4b   : > { %854 = vsyncadd (%p1125_p0), [#allocation3], 4294966784  ;;  %p1126_p6 = pmov %p1125_p0 }
  0x4c   : > { %p1127_p9 = pmov %p1125_p0 }
  0x4d   : > { %856 = dma.done.wait (%p1126_p6), [#allocation6], 512  }
  0x4e   : > { %858 = vsyncadd (%p1127_p9), [#allocation6], 4294966784  ;;  %p248_p10 = scmp.lt.s32.totalorder %s938_s22, 1  ;;  %v883_v0 = vmov 0.0|0.0   ;;  %vm884_vm0 = vmmov 0   ;;  %v885_v1 = vmov 0.0  }
  0x4f   : > { %668 = vmatprep.subr.bf16.mxu0 %v883_v0  ;;  %674 = vmatprep.subr.bf16.mxu1 %v883_v0  ;;  %v259_v2 = vld [vmem:[#allocation2] sm:$0xff]  ;;  %v260_v3 = vld [vmem:[#allocation2 + $0x8] sm:$0xff]  ;;  %v261_v7 = vld [vmem:[#allocation2 + $0x10] sm:$0xff]  ;;  %vm265_vm1 = vcmask 1046528   ;;  %vm269_vm2 = vcmask 261120   ;;  %vm418_vm3 = vcmask 1045504  }
  0x50   : > { %643 = vmatprep.mubr.msk.f32.mxu0 %vm884_vm0, %v885_v1  ;;  %s249_s30 = scalar_select %p248_p10, %s938_s22, 1  ;;  %654 = vmatprep.mubr.msk.f32.mxu1 %vm884_vm0, %v885_v1  ;;  %v255_v4 = vld [vmem:[%s1111_s1] sm:$0xff]  ;;  %v669_v5 = vpack.c.bf16 %v260_v3, %v259_v2  ;;  %v256_v6 = vld [vmem:[%s1111_s1 + $0x8] sm:$0xff]  ;;  %v262_v8 = vld [vmem:[#allocation2 + $0x18] sm:$0xff]  ;;  %vm503_vm4 = vcmask 211968  }
  0x51   : > { %v675_v9 = vpack.c.bf16 %v256_v6, %v255_v4  ;;  %v257_v10 = vld [vmem:[%s1111_s1 + $0x10] sm:$0xff]  ;;  %v258_v11 = vld [vmem:[%s1111_s1 + $0x18] sm:$0xff]  ;;  %v672_v13 = vpack.c.bf16 %v262_v8, %v261_v7  ;;  %v414_v18 = vld [vmem:[#allocation5] sm:$0xff]  ;;  %s245_s7 = sand.u32 1, %s869_s19   ;;  %p1128_p1 = scmp.ne.s32.totalorder %s1119_s28, 0 }
  0x52   : > { %s619_s8 = sshll.u32 %s249_s30, 4  ;;  %670 = vmatpush3.bf16.msra.mxu0 %v669_v5  ;;  %v678_v16 = vpack.c.bf16 %v258_v11, %v257_v10  ;;  %v415_v19 = vld [vmem:[#allocation5 + $0x8] sm:$0xff]  ;;  %v416_v22 = vld [vmem:[#allocation5 + $0x10] sm:$0xff]  ;;  %v417_v23 = vld [vmem:[#allocation5 + $0x18] sm:$0xff]  ;;  %s608_s23 = sshll.u32 %s245_s7, 3 }
  0x53   : > { %s252_s26 = scalar_lea.vmem %s1110_s0, %s619_s8  ;;  %676 = vmatpush3.bf16.msra.mxu1 %v675_v9  ;;  %671 = vmatprep.subr.bf16.mxu0 %v883_v0  ;;  %v681_v21 = vpack.c.bf16 %v415_v19, %v414_v18  ;;  %v684_v25 = vpack.c.bf16 %v417_v23, %v416_v22  ;;  %v614_v34 = vld [vmem:[%s1114_s4] ss:$0 sm:$0xff]  ;;  %s616_s8 = sshll.u32 %s938_s22, 7 }
  0x54   : > { %v253_v12 = vld [vmem:[%s252_s26] sm:$0xff]  ;;  %v254_v14 = vld [vmem:[%s252_s26 + $0x8] sm:$0x3]  ;;  %677 = vmatprep.subr.bf16.mxu1 %v883_v0  ;;  %s247_s10 = scalar_lea.vmem [#allocation7], %s608_s23  ;;  %s1068_s11 = scalar_lea.hbm %s1115_s5, %s616_s8 }
  0x55   : > { %v266_v15 = vrot.slane %v253_v12, 1  ;;  %v267_v17 = vrot.slane %v254_v14, 1  ;;  %v420_v24 = vrot.slane %v254_v14, 2  ;;  %v419_v26 = vrot.slane %v253_v12, 2  ;;  %s519_s25 = sshll.u32 %s247_s10, 4  ;;  %s506_s12 = scalar_lea.sflag [#allocation4], %s245_s7  ;;  %s1070_s25 = int_to_ptr.vmem [resolvable:$true] %s519_s25 }
  0x56   : > { %673 = vmatpush3.bf16.msra.mxu0 %v672_v13  ;;  %s807_s13 = scalar_lea.vmem %s1070_s25, 128  ;;  %s886_s22 = smov [#allocation7]  }
  0x57   : > { %v268_v20 = vsel %vm265_vm1, %v266_v15, %v267_v17  ;;  %679 = vmatpush3.bf16.msra.mxu1 %v678_v16  ;;  %680 = vmatprep.subr.bf16.mxu0 %v883_v0  ;;  %v421_v27 = vsel %vm418_vm3, %v419_v26, %v420_v24  ;;  %p808_p12 = scmp.ne.s32.totalorder %s1070_s25, %s807_s13  ;;  %s811_s14 = sshll.u32 %s886_s22, 4  ;;  %s812_s14 = int_to_ptr.vmem [resolvable:$false] %s811_s14 }
  0x58   : > { %s813_s15 = scalar_lea.vmem %s812_s14, 256  ;;  %p814_p4 = scmp.lt.s32.totalorder %s1070_s25, %s812_s14 }
  0x59   : > { %644 = vmatmul.mubr.msk.f32.vlgmr.msra.gmra.mrb[0].mxu0 %vm269_vm2, %v268_v20  ;;  %p809_p2 = pnand %p808_p12, %p1128_p1  ;;  %p815_p7 = scmp.lt.s32.totalorder %s813_s15, %s807_s13 }
  0x5a   : > { %655 = vmatmul.mubr.msk.f32.vlgmr.msra.gmra.mrb[0].mxu1 %vm269_vm2, %v253_v12  ;;  %682 = vmatpush3.bf16.msra.mxu0 %v681_v21 }
  0x5b   : > { %683 = vmatprep.subr.bf16.mxu0 %v883_v0  ;;  %665 = vmatprep.mubr.msk.f32.mxu0 %vm884_vm0, %v885_v1  ;;  %p810_p3 = pneg %p809_p2  ;;  %p816_p8 = por %p815_p7, %p814_p4 }
  0x5d   : > { %p817_p11 = pnand %p816_p8, %p810_p3 }
  0x5e   : > { %685 = vmatpush3.bf16.msra.mxu0 %v684_v25 }
  0x61   : > { %666 = vmatmul.mubr.msk.f32.vlgmr.msra.gmra.mrb[2].mxu0 %vm269_vm2, %v421_v27 }
 0x12c   : > { %v338_v28 = vpop.f32.mrb[0].mxu0 }
 0x12d   : > { %v645_v29 = vpop.f32.mrb[1].mxu0  ;;  %v410_v30 = vpop.f32.mrb[0].mxu1 }
 0x12e   : > { %v411_v31 = vadd.f32 %v410_v30, %v338_v28  ;;  %v656_v32 = vpop.f32.mrb[1].mxu1 }
 0x134   : > { %v490_v33 = vpop.f32.mrb[2].mxu0 }
 0x135   : > { %v494_v35 = vadd.f32 %v490_v33, %v411_v31  ;;  %v667_v36 = vpop.f32.mrb[3].mxu0 }
 0x137   : > { %v502_v37 = vadd.f32 %v614_v34, %v494_v35 }
 0x139   : > { %504 = vst.msk [vmem:[%s247_s10] sm:$0xff] %vm503_vm4, %v502_v37 }
 0x13a   : > { %820 = shalt.err (!%p817_p11)
}
 0x13b   : > { %s821_s16 = scalar_lea.hbm %s1068_s11, 128  ;;  %s825_s23 = scalar_lea.hbm %s1115_s5, 256 }
 0x13c   : > { %p822_p13 = scmp.ne.s32.totalorder %s1068_s11, %s821_s16  ;;  %p826_p6 = scmp.lt.u32.totalorder %s1068_s11, %s1115_s5 }
 0x13d   : > { %p827_p9 = scmp.lt.u32.totalorder %s825_s23, %s821_s16  ;;  %p829_p12 = scmp.lt.u32.totalorder %s821_s16, %s1068_s11 }
 0x13e   : > { %p823_p5 = pnand %p822_p13, %p1128_p1 }
 0x13f   : > { %p828_p10 = por %p827_p9, %p826_p6 }
 0x140   : > { %p824_p0 = pneg %p823_p5 }
 0x141   : > { %p830_p2 = por %p829_p12, %p828_p10 }
 0x143   : > { %p831_p3 = pnand %p830_p2, %p824_p0 }
 0x145   : > { %834 = shalt.err (!%p831_p3)
}
 0x146   : > { %694 = dma.vmem_to_hbm [thread:$0]  (%p1128_p1), %s1070_s25, 128, %s1068_s11, %s506_s12  }
 0x147 PF: > { %p711_p4 = scmp.ge.s32.totalorder %s877_s21, 2  ;;  %s531_s8 = sand.u32 1, %s865_s18  }
 0x148   : > { %p1129_p7 = scmp.ne.s32.totalorder %s1120_s29, 0  ;;  %s532_s10 = scalar_lea.sflag [#allocation4], %s531_s8 }
 0x14a   : > { %p704_p8 = pnand %p711_p4, %p1129_p7 }
 0x14c   : > { %860 = dma.done.wait (!%p704_p8), %s532_s10, 128  }
 0x14d   : > { %862 = vsyncadd (!%p704_p8), %s532_s10, 4294967168  ;;  %p17_p11 = scmp.ge.s32.totalorder %s942_s24, 4   ;;  %s1130_s18 = smov %s869_s19 }
 0x14e   : > { %s1131_s19 = smov %s873_s20  ;;  %s1132_s20 = smov %s953_s27 }
 0x14f   : > { %s1133_s21 = smov %s942_s24  ;;  %19 = sbr.rel (!%p17_p11) target bundleno = 5 (0x5), region = 84 }
 0x156   :  { %537 = vsyncpa [#allocation3], 1 }
 0x157   :  { %539 = vsyncpa [#allocation3 + $0x1], 1 }
 0x158   :  { %540 = vsyncpa [#allocation6], 1 }
 0x159   :  { %541 = vsyncpa [#allocation4], 1 }
 0x15a   :  { %543 = vsyncpa [#allocation4 + $0x1], 1 }

// kernel: encoder_forward.3
= control target key start
LH: loop header
LB: loop body
LE: loop exit
PB: predicated region body
PF: predicated region fallthrough
CT: control target
= control target key end

     0   :  { %15 = vsyncpa [#allocation3], 0  ;;  %s1283_s0 = inlined_call_operand.vmem [shape: f32[8,2,32], index: 0, kind: input, shape index: {}]   ;;  %s1284_s1 = inlined_call_operand.vmem [shape: s32[2,1], index: 1, kind: input, shape index: {}]   ;;  %s1285_s2 = inlined_call_operand.vmem [shape: f32[32,128], index: 2, kind: input, shape index: {}]   ;;  %s1286_s3 = inlined_call_operand.vmem [shape: f32[32,128], index: 3, kind: input, shape index: {}]   ;;  %s1287_s4 = inlined_call_operand.vmem [shape: f32[1,128], index: 4, kind: input, shape index: {}]   ;;  %s1288_s5 = inlined_call_operand.vmem [shape: f32[32,128], index: 5, kind: input, shape index: {}]   ;;  %s1289_s6 = inlined_call_operand.vmem [shape: f32[32,128], index: 6, kind: input, shape index: {}]   ;;  %s1290_s7 = inlined_call_operand.vmem [shape: f32[1,128], index: 7, kind: input, shape index: {}]   ;;  %s1291_s8 = inlined_call_operand.hbm [shape: f32[2,2,32], index: 8, kind: output, shape index: {0}]   ;;  %s1292_s9 = inlined_call_operand.hbm [shape: f32[2,2,32], index: 9, kind: output, shape index: {1}]  }
   0x1   :  { %16 = vsyncpa [#allocation5], 0  ;;  %s1108_s30 = smov 0  }
   0x2 LB: > { %s1114_s10 = sadd.s32 4294967295, %s1045_s30   ;;  %p825_p0 = scmp.ge.s32.totalorder %s1045_s30, 1  ;;  %s1045_s30 = sphi %s1108_s30, %s22_s30  }
   0x3   : > { %p281_p1 = scmp.lt.s32.totalorder %s1045_s30, 9 }
   0x5   : > { %p282_p2 = pnand %p825_p0, %p281_p1 }
   0x6   : > { %p311_p3 = scmp.lt.s32.totalorder (!%p282_p2), %s1114_s10, 7  ;;  %p827_p4 = scmp.ne.s32.totalorder (!%p282_p2), %s1114_s10, 0 }
   0x7   : > { %285 = sbr.rel (%p282_p2) target bundleno = 1460 (0x5b4), region = 52 }
   0xe   : > { %s312_s11 = scalar_select %p311_p3, %s1114_s10, 7 }
   0xf   : > { %318 = sbr.rel (%p827_p4) target bundleno = 22 (0x16), region = 56  ;;  %vm319_vm0 = vcmask (!%p827_p4), 254976   ;;  %v1047_v0 = vmov (!%p827_p4), 0.0  }
  0x10   : > { %s826_s12 = sshll.u32 %s312_s11, 1  ;;  %320 = vst.msk [vmem:[#allocation2] sm:$0x3] (!%p827_p4), %vm319_vm0, %v1047_v0  ;;  %321 = vst.msk [vmem:[#allocation2 + $0x2] sm:$0x3] (!%p827_p4), %vm319_vm0, %v1047_v0 }
  0x11   : > { %s1123_s15 = scalar_lea.vmem %s1283_s0, %s826_s12  ;;  %322 = vst.msk [vmem:[#allocation4] sm:$0x3] (!%p827_p4), %vm319_vm0, %v1047_v0  ;;  %323 = vst.msk [vmem:[#allocation4 + $0x2] sm:$0x3] (!%p827_p4), %vm319_vm0, %v1047_v0 }
  0x16 PF: > { %v334_v1 = vld [vmem:[%s1286_s3] sm:$0xff]  ;;  %v335_v2 = vld [vmem:[%s1286_s3 + $0x8] sm:$0xff]  ;;  %v1048_v4 = vmov 0.0|0.0   ;;  %v336_v7 = vld [vmem:[%s1286_s3 + $0x10] sm:$0xff]  ;;  %vm1049_vm1 = vmmov 0   ;;  %v1050_v12 = vmov 0.0   ;;  %v325_v31 = vstv %s1114_s10 }
  0x17   : > { %v330_v3 = vld [vmem:[%s1285_s2] sm:$0xff]  ;;  %906 = vmatprep.subr.bf16.mxu0 %v1048_v4  ;;  %912 = vmatprep.subr.bf16.mxu1 %v1048_v4  ;;  %v907_v5 = vpack.c.bf16 %v335_v2, %v334_v1  ;;  %v331_v6 = vld [vmem:[%s1285_s2 + $0x8] sm:$0xff]  ;;  %v337_v8 = vld [vmem:[%s1286_s3 + $0x18] sm:$0xff]  ;;  %vm339_vm2 = vcmask 261120   ;;  %v1051_v24 = vmov 0   ;;  %s1053_s16 = smov 32  }
  0x18   : > { %v913_v9 = vpack.c.bf16 %v331_v6, %v330_v3  ;;  %v332_v10 = vld [vmem:[%s1285_s2 + $0x10] sm:$0xff]  ;;  %v333_v11 = vld [vmem:[%s1285_s2 + $0x18] sm:$0xff]  ;;  %870 = vmatprep.mubr.msk.f32.mxu0 %vm1049_vm1, %v1050_v12  ;;  %881 = vmatprep.mubr.msk.f32.mxu1 %vm1049_vm1, %v1050_v12  ;;  %v910_v13 = vpack.c.bf16 %v337_v8, %v336_v7  ;;  %v328_v15 = vld [vmem:[#allocation2] sm:$0x3]  ;;  %s1054_s19 = smov 96   ;;  %vm535_vm5 = vcmask 254976  }
  0x19   : > { %908 = vmatpush3.bf16.msra.mxu0 %v907_v5  ;;  %v916_v14 = vpack.c.bf16 %v333_v11, %v332_v10  ;;  %v327_v16 = vld [vmem:[%s1123_s15] sm:$0x3]  ;;  %961 = vset.pattern.permute.xlu1 %v1051_v24  ;;  %s1052_s15 = smov 64   ;;  %v329_v26 = vld [vmem:[#allocation4] sm:$0x3]  ;;  %v551_v41 = vld [vmem:[%s1289_s6 + $0x8] sm:$0xff] }
  0x1a   : > { %914 = vmatpush3.bf16.msra.mxu1 %v913_v9  ;;  %909 = vmatprep.subr.bf16.mxu0 %v1048_v4  ;;  %v830_v18 = vld [vmem:[%s1287_s4] ss:$0 sm:$0xff]  ;;  %v547_v44 = vld [vmem:[%s1288_s5 + $0x8] sm:$0xff]  ;;  %v552_v45 = vld [vmem:[%s1289_s6 + $0x10] sm:$0xff]  ;;  %p938_p5 = scmp.eq.s32.totalorder %s1114_s10, 7 }
  0x1b   : > { %915 = vmatprep.subr.bf16.mxu1 %v1048_v4  ;;  %962 = vset.pattern.permute.xlu0 %v1051_v24  ;;  %v324_v30 = vld [vmem:[%s1284_s1] sm:$0x3]  ;;  %v553_v46 = vld [vmem:[%s1289_s6 + $0x18] sm:$0xff]  ;;  %v548_v48 = vld [vmem:[%s1288_s5 + $0x10] sm:$0xff] }
  0x1c   : > { %vm326_vm3 = vcmp.lt.s32.totalorder %v325_v31, %v324_v30  ;;  %v550_v40 = vld [vmem:[%s1289_s6] sm:$0xff]  ;;  %v549_v49 = vld [vmem:[%s1288_s5 + $0x18] sm:$0xff]  ;;  %v922_v50 = vpack.c.bf16 %v553_v46, %v552_v45 }
  0x1d   : > { %911 = vmatpush3.bf16.msra.mxu0 %v910_v13  ;;  %v521_v35 = vsel %vm326_vm3, 1, %v1051_v24  ;;  %v546_v42 = vld [vmem:[%s1288_s5] sm:$0xff]  ;;  %v919_v43 = vpack.c.bf16 %v551_v41, %v550_v40  ;;  %v928_v51 = vpack.c.bf16 %v549_v49, %v548_v48 }
  0x1e   : > { %917 = vmatpush3.bf16.msra.mxu1 %v916_v14  ;;  %918 = vmatprep.subr.bf16.mxu0 %v1048_v4  ;;  %v925_v47 = vpack.c.bf16 %v547_v44, %v546_v42  ;;  %v543_v52 = vld [vmem:[#allocation2 + $0x2] sm:$0x3]  ;;  %v545_v59 = vld [vmem:[#allocation4 + $0x2] sm:$0x3]  ;;  %v834_v63 = vld [vmem:[%s1290_s7] ss:$0 sm:$0xff] }
  0x1f   : > { %924 = vmatprep.subr.bf16.mxu1 %v1048_v4 }
  0x20   : > { %871 = vmatmul.mubr.msk.f32.vlgmr.msra.gmra.mrb[0].mxu0 %vm339_vm2, %v328_v15 }
  0x21   : > { %882 = vmatmul.mubr.msk.f32.vlgmr.msra.gmra.mrb[0].mxu1 %vm339_vm2, %v327_v16  ;;  %892 = vmatprep.mubr.msk.f32.mxu0 %vm1049_vm1, %v1050_v12 }
  0x22   : > { %903 = vmatprep.mubr.msk.f32.mxu1 %vm1049_vm1, %v1050_v12  ;;  %920 = vmatpush3.bf16.msra.mxu0 %v919_v43 }
  0x23   : > { %926 = vmatpush3.bf16.msra.mxu1 %v925_v47  ;;  %921 = vmatprep.subr.bf16.mxu0 %v1048_v4 }
  0x24   : > { %927 = vmatprep.subr.bf16.mxu1 %v1048_v4 }
  0x26   : > { %923 = vmatpush3.bf16.msra.mxu0 %v922_v50 }
  0x27   : > { %929 = vmatpush3.bf16.msra.mxu1 %v928_v51 }
  0x29   : > { %893 = vmatmul.mubr.msk.f32.vlgmr.msra.gmra.mrb[2].mxu0 %vm339_vm2, %v543_v52 }
  0xf3   : > { %v409_v17 = vpop.f32.mrb[0].mxu0 }
  0xf4   : > { %v482_v19 = vpop.f32.mrb[0].mxu1  ;;  %v872_v20 = vpop.f32.mrb[1].mxu0 }
  0xf5   : > { %v483_v21 = vadd.f32 %v482_v19, %v409_v17  ;;  %v883_v22 = vpop.f32.mrb[1].mxu1 }
  0xf7   : > { %v492_v23 = vadd.f32 %v830_v18, %v483_v21 }
  0xf9   : > { %963 = vtanh.f32 %v492_v23  ;;  %v831_v27 = vmul.f32 -1.442695, %v492_v23 }
  0xfb   : > { %965 = vpow2.f32 %v831_v27 }
  0xfc   : > { %v624_v60 = vpop.f32.mrb[2].mxu0 }
  0xfd   : > { %v894_v61 = vpop.f32.mrb[3].mxu0 }
 0x103   : > { %v964_v25 = vpop.eup %963 }
 0x104   : > { %506 = vrot.lane.b32.xlu0 %v964_v25, %s1052_s15 }
 0x105   : > { %v966_v28 = vpop.eup %965 }
 0x106   : > { %v496_v29 = vadd.f32 1.0, %v966_v28 }
 0x108   : > { %501 = vrot.lane.b32.xlu0 %v329_v26, %s1053_s16  ;;  %967 = vrcp.f32 %v496_v29 }
 0x112   : > { %v968_v32 = vpop.eup %967 }
 0x176   : > { %v507_v33 = vpop.permute.xlu0 %506 }
 0x177   : > { %v509_v34 = vmul.f32 %v968_v32, %v507_v33 }
 0x179   : > { %511 = vrot.lane.b32.xlu1 %v509_v34, %s1053_s16 }
 0x17a   : > { %v1174_v36 = vpop.permute.xlu0 %501 }
 0x17b   : > { %v504_v37 = vmul.f32 %v968_v32, %v1174_v36 }
 0x17d   : > { %523 = vperm.xlu1 %961, %v521_v35  }
 0x181   : > { %526 = vrot.lane.b32.xlu1 %v328_v15, %s1054_s19 }
 0x1eb   : > { %v512_v38 = vpop.permute.xlu1 %511 }
 0x1ec   : > { %v1177_v39 = vadd.f32 %v512_v38, %v504_v37 }
 0x1ee   : > { %969 = vtanh.f32 %v1177_v39 }
 0x1f8   : > { %v970_v53 = vpop.eup %969 }
 0x1f9   : > { %517 = vrot.lane.b32.xlu0 %v970_v53, %s1052_s15 }
 0x1fc   : > { %v524_v54 = vpop.permute.xlu1 %523 }
 0x1fd   : > { %vm525_vm4 = vcmp.eq.s32.totalorder %v524_v54, 1 }
 0x1fe   : > { %v530_v16 = vsel %vm525_vm4, %v1177_v39, %v1174_v36 }
 0x200   : > { %v527_v56 = vpop.permute.xlu1 %526 }
 0x26b   : > { %v518_v55 = vpop.permute.xlu0 %517 }
 0x26c   : > { %v520_v57 = vmul.f32 %v968_v32, %v518_v55 }
 0x26e   : > { %v529_v58 = vsel %vm525_vm4, %v520_v57, %v527_v56 }
 0x26f   : > { %532 = vrot.lane.b32.xlu0 %v529_v58, %s1053_s16 }
 0x273   : > { %715 = vrot.lane.b32.xlu0 %v545_v59, %s1053_s16 }
 0x2e1   : > { %v533_v62 = vpop.permute.xlu0 %532 }
 0x2e2   : > { %536 = vst.msk [vmem:[#allocation2] sm:$0x3] %vm535_vm5, %v533_v62  ;;  %904 = vmatmul.mubr.msk.f32.vlgmr.msra.gmra.mrb[2].mxu1 %vm339_vm2, %v533_v62 }
 0x2e5   : > { %v716_v11 = vpop.permute.xlu0 %715 }
 0x3b5   : > { %v696_v0 = vpop.f32.mrb[2].mxu1 }
 0x3b6   : > { %v697_v1 = vadd.f32 %v696_v0, %v624_v60  ;;  %v905_v2 = vpop.f32.mrb[3].mxu1 }
 0x3b8   : > { %v706_v3 = vadd.f32 %v834_v63, %v697_v1 }
 0x3ba   : > { %971 = vtanh.f32 %v706_v3  ;;  %v835_v5 = vmul.f32 -1.442695, %v706_v3 }
 0x3bc   : > { %973 = vpow2.f32 %v835_v5 }
 0x3c4   : > { %v972_v4 = vpop.eup %971 }
 0x3c5   : > { %720 = vrot.lane.b32.xlu1 %v972_v4, %s1052_s15 }
 0x3c6   : > { %v974_v6 = vpop.eup %973 }
 0x3c7   : > { %v710_v7 = vadd.f32 1.0, %v974_v6 }
 0x3c9   : > { %975 = vrcp.f32 %v710_v7 }
 0x3d3   : > { %v976_v8 = vpop.eup %975 }
 0x3d4   : > { %v718_v12 = vmul.f32 %v976_v8, %v716_v11 }
 0x437   : > { %v721_v9 = vpop.permute.xlu1 %720 }
 0x438   : > { %v723_v10 = vmul.f32 %v976_v8, %v721_v9 }
 0x43a   : > { %725 = vrot.lane.b32.xlu1 %v723_v10, %s1053_s16 }
 0x43e   : > { %735 = vrot.lane.b32.xlu1 %v543_v52, %s1054_s19 }
 0x4ac   : > { %v726_v13 = vpop.permute.xlu1 %725 }
 0x4ad   : > { %v728_v14 = vadd.f32 %v726_v13, %v718_v12 }
 0x4af   : > { %977 = vtanh.f32 %v728_v14  ;;  %v744_v17 = vsel %vm525_vm4, %v728_v14, %v716_v11 }
 0x4b0   : > { %v736_v19 = vpop.permute.xlu1 %735 }
 0x4b9   : > { %v978_v15 = vpop.eup %977 }
 0x4ba   : > { %731 = vrot.lane.b32.xlu0 %v978_v15, %s1052_s15  ;;  %s1055_s15 = smov [#allocation4]  }
 0x4bb   : > { %s769_s22 = sshll.u32 %s1055_s15, 4  ;;  %s770_s22 = int_to_ptr.vmem [resolvable:$true] %s769_s22 }
 0x4bc   : > { %s979_s23 = scalar_lea.vmem %s770_s22, 64  ;;  %p986_p9 = scmp.lt.s32.totalorder %s770_s22, %s770_s22 }
 0x4bd   : > { %p980_p6 = scmp.ne.s32.totalorder %s770_s22, %s979_s23  ;;  %p987_p10 = scmp.lt.s32.totalorder %s979_s23, %s979_s23 }
 0x4be   : > { %538 = vrot.lane.b32.xlu0 %v530_v16, %s1054_s19 }
 0x4bf   : > { %p981_p7 = pnand %p980_p6, %p938_p5  ;;  %p988_p11 = por %p987_p10, %p986_p9 }
 0x4c1   : > { %p982_p8 = pneg %p981_p7 }
 0x4c2   : > { %746 = vrot.lane.b32.xlu0 %v744_v17, %s1054_s19 }
 0x4c3   : > { %p989_p12 = pnand %p988_p11, %p982_p8 }
 0x52c   : > { %v732_v18 = vpop.permute.xlu0 %731 }
 0x52d   : > { %v734_v20 = vmul.f32 %v976_v8, %v732_v18 }
 0x52f   : > { %v738_v21 = vsel %vm525_vm4, %v734_v20, %v736_v19 }
 0x530   : > { %740 = vrot.lane.b32.xlu1 %v738_v21, %s1053_s16  ;;  %v539_v22 = vpop.permute.xlu0 %538 }
 0x531   : > { %541 = vst.msk [vmem:[#allocation4] sm:$0x3] %vm535_vm5, %v539_v22 }
 0x534   : > { %v747_v23 = vpop.permute.xlu0 %746 }
 0x535   : > { %749 = vst.msk [vmem:[#allocation4 + $0x2] sm:$0x3] %vm535_vm5, %v747_v23 }
 0x536   : > { %992 = shalt.err (!%p989_p12)
}
 0x537   : > { %s993_s25 = scalar_lea.hbm %s1292_s9, 64 }
 0x538   : > { %p994_p13 = scmp.ne.s32.totalorder %s1292_s9, %s993_s25  ;;  %p999_p2 = scmp.lt.u32.totalorder %s993_s25, %s1292_s9 }
 0x53a   : > { %p995_p0 = pnand %p994_p13, %p938_p5 }
 0x53c   : > { %p996_p1 = pneg %p995_p0 }
 0x53e   : > { %p1001_p3 = pnand %p999_p2, %p996_p1 }
 0x540   : > { %1004 = shalt.err (!%p1001_p3)
}
 0x541   : > { %s1056_s11 = smov 2   ;;  %s1057_s14 = smov [#allocation2]  }
 0x542   : > { %933 = dma.vmem_to_hbm [thread:$0]  (%p938_p5), %s770_s22, 64, %s1292_s9, [#allocation5], %s1053_s16, %s1053_s16, %s1056_s11  }
 0x543   : > { %s756_s17 = sshll.u32 %s1057_s14, 4  ;;  %s757_s17 = int_to_ptr.vmem [resolvable:$true] %s756_s17 }
 0x544   : > { %s1005_s18 = scalar_lea.vmem %s757_s17, 64  ;;  %p1012_p8 = scmp.lt.s32.totalorder %s757_s17, %s757_s17 }
 0x545   : > { %p1006_p4 = scmp.ne.s32.totalorder %s757_s17, %s1005_s18  ;;  %p1013_p9 = scmp.lt.s32.totalorder %s1005_s18, %s1005_s18 }
 0x547   : > { %p1007_p6 = pnand %p1006_p4, %p938_p5  ;;  %p1014_p10 = por %p1013_p9, %p1012_p8 }
 0x549   : > { %p1008_p7 = pneg %p1007_p6 }
 0x54b   : > { %p1015_p11 = pnand %p1014_p10, %p1008_p7 }
 0x5a2   : > { %v741_v24 = vpop.permute.xlu1 %740 }
 0x5a3   : > { %743 = vst.msk [vmem:[#allocation2 + $0x2] sm:$0x3] %vm535_vm5, %v741_v24 }
 0x5a4   : > { %1018 = shalt.err (!%p1015_p11)
}
 0x5a5   : > { %s1019_s15 = scalar_lea.hbm %s1291_s8, 64 }
 0x5a6   : > { %p1020_p12 = scmp.ne.s32.totalorder %s1291_s8, %s1019_s15  ;;  %p1025_p1 = scmp.lt.u32.totalorder %s1019_s15, %s1291_s8 }
 0x5a8   : > { %p1021_p13 = pnand %p1020_p12, %p938_p5 }
 0x5aa   : > { %p1022_p0 = pneg %p1021_p13 }
 0x5ac   : > { %p1027_p2 = pnand %p1025_p1, %p1022_p0 }
 0x5ae   : > { %1030 = shalt.err (!%p1027_p2)
}
 0x5af   : > { %931 = dma.vmem_to_hbm [thread:$0]  (%p938_p5), %s757_s17, 64, %s1291_s8, [#allocation3], %s1053_s16, %s1053_s16, %s1056_s11  }
 0x5b0   : > { %1036 = dma.done.wait (%p938_p5), [#allocation3], 64  }
 0x5b1   : > { %1038 = vsyncadd (%p938_p5), [#allocation3], 4294967232 }
 0x5b2   : > { %1040 = dma.done.wait (%p938_p5), [#allocation5], 64  }
 0x5b3   : > { %1042 = vsyncadd (%p938_p5), [#allocation5], 4294967232 }
 0x5b4 PF: > { %s22_s30 = sadd.s32 1, %s1045_s30  }
 0x5b5   : > { %p19_p3 = scmp.ge.s32.totalorder %s22_s30, 10  }
 0x5b7   :  { %21 = sbr.rel (!%p19_p3) target bundleno = 2 (0x2), region = 93 }
 0x5be   :  { %789 = vsyncpa [#allocation3], 1 }
 0x5bf   :  { %791 = vsyncpa [#allocation3 + $0x1], 1 }
 0x5c0   :  { %792 = vsyncpa [#allocation5], 1 }

</bundles_post_ra>
